<compile_context>
chip_gen: v6e
topology: v6e:2x2x1
jax: 0.10.0
libtpu: 0.0.40
codegen_flags: <defaults>
</compile_context>

<pallas_src>
import jax
import jax.numpy as jnp
from jax.experimental import pallas as pl
from jax.experimental.pallas import tpu as pltpu


def _round_up(x, m):
    return ((x + m - 1) // m) * m


def _heads_kernel(h_ref, wr_ref, br_ref, we_ref, be_ref, rel_ref, ent_ref):
    """One M tile: cast activations to bf16, two MXU matmuls, f32 bias add."""
    h = h_ref[...].astype(jnp.bfloat16)
    acc_r = jnp.dot(h, wr_ref[...], preferred_element_type=jnp.float32)
    rel_ref[...] = (acc_r + br_ref[...]).astype(rel_ref.dtype)
    acc_e = jnp.dot(h, we_ref[...], preferred_element_type=jnp.float32)
    ent_ref[...] = (acc_e + be_ref[...]).astype(ent_ref.dtype)


def prepare_head_params(w_rel, b_rel, w_ent, b_ent):
    """One-time (init-time) head-parameter prep.

    Casts weights to bf16 (native MXU input dtype) and reshapes biases to
    [1, N] rows.  Call ONCE when parameters are created/loaded so the
    per-forward path does no weight casting / concatenation / padding.
    Weights are stored [in, out] (transposed vs nn.Linear's [out, in]).
    """
    return dict(
        w_rel=jnp.asarray(w_rel, dtype=jnp.bfloat16),
        b_rel=jnp.asarray(b_rel, dtype=jnp.float32).reshape(1, -1),
        w_ent=jnp.asarray(w_ent, dtype=jnp.bfloat16),
        b_ent=jnp.asarray(b_ent, dtype=jnp.float32).reshape(1, -1),
    )


# Conservative VMEM budget: v7x has 64 MiB physical per TensorCore; leave
# ~16 MiB headroom for compiler-internal scratch (v5e/v6e have 128 MiB).
_VMEM_BUDGET = 48 << 20
_TM_CAP = 1024  # rows per grid step; multiple of 16 (bf16 packs 2 rows/sublane)


def base_model_heads(hidden, params, *, out_dtype=jnp.float32):
    """Apply relation_head and entity_head to `hidden` ([B, S, H]).

    params: dict from prepare_head_params().
    Returns (rel_logits [B, S, R], ent_logits [B, S, E]) in `out_dtype`.
    """
    w_rel, b_rel = params["w_rel"], params["b_rel"]
    w_ent, b_ent = params["w_ent"], params["b_ent"]
    B, S, H = hidden.shape
    R = w_rel.shape[1]
    E = w_ent.shape[1]
    M = B * S
    out_itemsize = jnp.dtype(out_dtype).itemsize
    h_itemsize = jnp.dtype(hidden.dtype).itemsize

    # Resident-weight footprint (2-buffered allocation, bf16 weights + f32 bias).
    weight_bytes = 2 * (H * R + H * E) * 2 + 2 * (R + E) * 4
    if weight_bytes > _VMEM_BUDGET // 2:
        # TODO(synk): N-tiled fallback for very large vocab heads.
        raise ValueError("head weights too large for resident-weight kernel")

    # ---- M tiling: biggest tile that fits the VMEM budget -----------------
    M_pad = _round_up(M, 16)
    TM = min(_TM_CAP, M_pad)

    def _footprint(tm):
        # double-buffered hidden tile + resident weights/bias + 2-buffered outputs
        return (2 * tm * H * h_itemsize) + weight_bytes + (
            2 * tm * (R + E) * out_itemsize)

    while TM > 16 and _footprint(TM) > _VMEM_BUDGET - (4 << 20):
        TM //= 2
    TM = max(16, _round_up(TM, 16))
    M_pad = _round_up(M_pad, TM)
    m_tiles = M_pad // TM

    h2d = hidden.reshape(M, H)
    if M_pad > M:
        # Only the (small, H-wide) activations get padded; logits never do.
        h2d = jnp.pad(h2d, ((0, M_pad - M), (0, 0)))

    cost = pl.CostEstimate(
        flops=2 * M_pad * H * (R + E),
        transcendentals=0,
        bytes_accessed=(M_pad * H * h_itemsize)            # hidden, streamed once
        + (H * (R + E) * 2) + ((R + E) * 4)                # weights/bias, loaded once
        + (M_pad * (R + E) * out_itemsize),                # logits, written once
    )

    rel2d, ent2d = pl.pallas_call(
        _heads_kernel,
        out_shape=(
            jax.ShapeDtypeStruct((M_pad, R), out_dtype),
            jax.ShapeDtypeStruct((M_pad, E), out_dtype),
        ),
        grid_spec=pltpu.PrefetchScalarGridSpec(
            num_scalar_prefetch=0,
            grid=(m_tiles,),
            in_specs=[
                pl.BlockSpec((TM, H), lambda i: (i, 0)),   # hidden tile (streamed)
                pl.BlockSpec((H, R), lambda i: (0, 0)),    # rel weight (resident)
                pl.BlockSpec((1, R), lambda i: (0, 0)),    # rel bias (resident)
                pl.BlockSpec((H, E), lambda i: (0, 0)),    # ent weight (resident)
                pl.BlockSpec((1, E), lambda i: (0, 0)),    # ent bias (resident)
            ],
            out_specs=[
                pl.BlockSpec((TM, R), lambda i: (i, 0)),
                pl.BlockSpec((TM, E), lambda i: (i, 0)),
            ],
        ),
        compiler_params=pltpu.CompilerParams(
            dimension_semantics=("parallel",),
            vmem_limit_bytes=_VMEM_BUDGET,
        ),
        cost_estimate=cost,
    )(h2d, w_rel, b_rel, w_ent, b_ent)

    if M_pad > M:
        rel2d = rel2d[:M]
        ent2d = ent2d[:M]
    return rel2d.reshape(B, S, R), ent2d.reshape(B, S, E)


if __name__ == "__main__":
    # Deterministic synthetic parameters / inputs (no checkpoint load).
    B, S = 2, 8
    hidden_size = 32
    relation_vocab_size = 16
    entity_vocab_size = 48

    key = jax.random.PRNGKey(0)
    k_h, k_wr, k_br, k_we, k_be = jax.random.split(key, 5)

    hidden = jax.random.normal(k_h, (B, S, hidden_size), dtype=jnp.float32)
    # Stored pre-transposed ([in, out]) relative to nn.Linear's [out, in].
    w_rel = jax.random.normal(k_wr, (hidden_size, relation_vocab_size),
                              dtype=jnp.float32) * 0.02
    b_rel = jax.random.normal(k_br, (relation_vocab_size,),
                              dtype=jnp.float32) * 0.02
    w_ent = jax.random.normal(k_we, (hidden_size, entity_vocab_size),
                              dtype=jnp.float32) * 0.02
    b_ent = jax.random.normal(k_be, (entity_vocab_size,),
                              dtype=jnp.float32) * 0.02

    # One-time parameter prep (init time, NOT in the per-step forward path).
    params = prepare_head_params(w_rel, b_rel, w_ent, b_ent)

    rel_logits, ent_logits = base_model_heads(hidden, params)
    jax.block_until_ready((rel_logits, ent_logits))

    # Reference (plain JAX) with the same bf16 rounding the kernel applies to
    # the matmul inputs; bias add stays f32.
    h_bf = hidden.astype(jnp.bfloat16).astype(jnp.float32)
    wr_bf = w_rel.astype(jnp.bfloat16).astype(jnp.float32)
    we_bf = w_ent.astype(jnp.bfloat16).astype(jnp.float32)
    rel_ref = h_bf @ wr_bf + b_rel
    ent_ref = h_bf @ we_bf + b_ent

    assert rel_logits.shape == (B, S, relation_vocab_size)
    assert ent_logits.shape == (B, S, entity_vocab_size)
    assert jnp.allclose(rel_logits, rel_ref, atol=1e-3, rtol=1e-3)
    assert jnp.allclose(ent_logits, ent_ref, atol=1e-3, rtol=1e-3)

    print("KERNEL_OK")
</pallas_src>

<mosaic_0001>
module attributes {stable_mosaic.version = 11 : i64} {
  func.func @_heads_kernel(%arg0: i32, %arg1: memref<16x32xf32, #tpu.memory_space<vmem>>, %arg2: memref<32x16xbf16, #tpu.memory_space<vmem>>, %arg3: memref<1x16xf32, #tpu.memory_space<vmem>>, %arg4: memref<32x48xbf16, #tpu.memory_space<vmem>>, %arg5: memref<1x48xf32, #tpu.memory_space<vmem>>, %arg6: memref<16x16xf32, #tpu.memory_space<vmem>>, %arg7: memref<16x48xf32, #tpu.memory_space<vmem>>) attributes {dimension_semantics = [#tpu.dimension_semantics<parallel>], iteration_bounds = array<i64: 1>, scalar_prefetch = 0 : i64, scratch_operands = 0 : i64, tpu.core_type = #tpu.core_type<tc>, window_params = [{transform_indices = @transform_0, window_bounds = array<i64: 16, 32>}, {pipeline_mode = #tpu.pipeline_mode<synchronous>, transform_indices = @transform_1, window_bounds = array<i64: 32, 16>}, {pipeline_mode = #tpu.pipeline_mode<synchronous>, transform_indices = @transform_2, window_bounds = array<i64: 1, 16>}, {pipeline_mode = #tpu.pipeline_mode<synchronous>, transform_indices = @transform_3, window_bounds = array<i64: 32, 48>}, {pipeline_mode = #tpu.pipeline_mode<synchronous>, transform_indices = @transform_4, window_bounds = array<i64: 1, 48>}, {transform_indices = @transform_5, window_bounds = array<i64: 16, 16>}, {transform_indices = @transform_6, window_bounds = array<i64: 16, 48>}]} {
    %c0 = arith.constant 0 : index
    %c0_0 = arith.constant 0 : index
    %0 = vector.load %arg1[%c0, %c0_0] : memref<16x32xf32, #tpu.memory_space<vmem>>, vector<16x32xf32>
    %1 = arith.truncf %0 : vector<16x32xf32> to vector<16x32xbf16>
    %c0_1 = arith.constant 0 : index
    %c0_2 = arith.constant 0 : index
    %2 = vector.load %arg2[%c0_1, %c0_2] : memref<32x16xbf16, #tpu.memory_space<vmem>>, vector<32x16xbf16>
    %cst = arith.constant dense<0.000000e+00> : vector<16x16xf32>
    %3 = tpu.matmul %1, %2, %cst {dimension_numbers = #tpu.dot_dimension_numbers<[1], [0], [0], [1], [0, 0, 1, 1], [], []>} : vector<16x32xbf16>, vector<32x16xbf16>, vector<16x16xf32> -> vector<16x16xf32>
    %c0_3 = arith.constant 0 : index
    %c0_4 = arith.constant 0 : index
    %4 = vector.load %arg3[%c0_3, %c0_4] : memref<1x16xf32, #tpu.memory_space<vmem>>, vector<1x16xf32>
    %5 = vector.broadcast %4 : vector<1x16xf32> to vector<16x16xf32>
    %6 = arith.addf %3, %5 : vector<16x16xf32>
    %c0_5 = arith.constant 0 : index
    %c0_6 = arith.constant 0 : index
    %7 = vector.load %arg6[%c0_5, %c0_6] : memref<16x16xf32, #tpu.memory_space<vmem>>, vector<16x16xf32>
    tpu.vector_store %arg6[%c0_5, %c0_6], %6 {strides = array<i32>} : memref<16x16xf32, #tpu.memory_space<vmem>>, vector<16x16xf32>,
    %c0_7 = arith.constant 0 : index
    %c0_8 = arith.constant 0 : index
    %8 = vector.load %arg4[%c0_7, %c0_8] : memref<32x48xbf16, #tpu.memory_space<vmem>>, vector<32x48xbf16>
    %cst_9 = arith.constant dense<0.000000e+00> : vector<16x48xf32>
    %9 = tpu.matmul %1, %8, %cst_9 {dimension_numbers = #tpu.dot_dimension_numbers<[1], [0], [0], [1], [0, 0, 1, 1], [], []>} : vector<16x32xbf16>, vector<32x48xbf16>, vector<16x48xf32> -> vector<16x48xf32>
    %c0_10 = arith.constant 0 : index
    %c0_11 = arith.constant 0 : index
    %10 = vector.load %arg5[%c0_10, %c0_11] : memref<1x48xf32, #tpu.memory_space<vmem>>, vector<1x48xf32>
    %11 = vector.broadcast %10 : vector<1x48xf32> to vector<16x48xf32>
    %12 = arith.addf %9, %11 : vector<16x48xf32>
    %c0_12 = arith.constant 0 : index
    %c0_13 = arith.constant 0 : index
    %13 = vector.load %arg7[%c0_12, %c0_13] : memref<16x48xf32, #tpu.memory_space<vmem>>, vector<16x48xf32>
    tpu.vector_store %arg7[%c0_12, %c0_13], %12 {strides = array<i32>} : memref<16x48xf32, #tpu.memory_space<vmem>>, vector<16x48xf32>,
    return
  }
  func.func @transform_0(%arg0: i32) -> (i32, i32) {
    %c0_i32 = arith.constant 0 : i32
    %c0_i32_0 = arith.constant 0 : i32
    return %arg0, %c0_i32 : i32, i32
  }
  func.func @transform_1(%arg0: i32) -> (i32, i32) {
    %c0_i32 = arith.constant 0 : i32
    %c0_i32_0 = arith.constant 0 : i32
    %c0_i32_1 = arith.constant 0 : i32
    return %c0_i32, %c0_i32_0 : i32, i32
  }
  func.func @transform_2(%arg0: i32) -> (i32, i32) {
    %c0_i32 = arith.constant 0 : i32
    %c0_i32_0 = arith.constant 0 : i32
    %c0_i32_1 = arith.constant 0 : i32
    return %c0_i32, %c0_i32_0 : i32, i32
  }
  func.func @transform_3(%arg0: i32) -> (i32, i32) {
    %c0_i32 = arith.constant 0 : i32
    %c0_i32_0 = arith.constant 0 : i32
    %c0_i32_1 = arith.constant 0 : i32
    return %c0_i32, %c0_i32_0 : i32, i32
  }
  func.func @transform_4(%arg0: i32) -> (i32, i32) {
    %c0_i32 = arith.constant 0 : i32
    %c0_i32_0 = arith.constant 0 : i32
    %c0_i32_1 = arith.constant 0 : i32
    return %c0_i32, %c0_i32_0 : i32, i32
  }
  func.func @transform_5(%arg0: i32) -> (i32, i32) {
    %c0_i32 = arith.constant 0 : i32
    %c0_i32_0 = arith.constant 0 : i32
    return %arg0, %c0_i32 : i32, i32
  }
  func.func @transform_6(%arg0: i32) -> (i32, i32) {
    %c0_i32 = arith.constant 0 : i32
    %c0_i32_0 = arith.constant 0 : i32
    return %arg0, %c0_i32 : i32, i32
  }
}

</mosaic_0001>

<bundles_post_ra>
// kernel: tpu_custom_call.1
= control target key start
LH: loop header
LB: loop body
LE: loop exit
PB: predicated region body
PF: predicated region fallthrough
CT: control target
= control target key end

     0   :  { %12 = vsyncpa [#allocation3], 0  ;;  %s397_s0 = inlined_call_operand.vmem [shape: f32[16,32], index: 0, kind: input, shape index: {}]   ;;  %s398_s1 = inlined_call_operand.vmem [shape: bf16[32,16], index: 1, kind: input, shape index: {}]   ;;  %s399_s2 = inlined_call_operand.vmem [shape: f32[1,16], index: 2, kind: input, shape index: {}]   ;;  %s400_s3 = inlined_call_operand.hbm [shape: bf16[32,48], index: 3, kind: input, shape index: {}]   ;;  %s401_s4 = inlined_call_operand.vmem [shape: f32[1,48], index: 4, kind: input, shape index: {}]   ;;  %s402_s5 = inlined_call_operand.hbm [shape: f32[16,16], index: 5, kind: output, shape index: {0}]   ;;  %s403_s6 = inlined_call_operand.hbm [shape: f32[16,48], index: 6, kind: output, shape index: {1}]  }
   0x1   :  { %13 = vsyncpa [#allocation4], 0 }
   0x2   :  { %14 = vsyncpa [#allocation7], 0  ;;  %s322_s21 = smov [#allocation2]  }
   0x3   :  { %s26_s22 = sshll.u32 %s322_s21, 4  ;;  %s27_s22 = int_to_ptr.vmem [resolvable:$true] %s26_s22 }
   0x4   :  { %s264_s23 = scalar_lea.vmem %s27_s22, 256  ;;  %p269_p1 = scmp.lt.s32.totalorder %s27_s22, %s27_s22 }
   0x5   :  { %p265_p0 = scmp.ne.s32.totalorder %s27_s22, %s264_s23  ;;  %p270_p2 = scmp.lt.s32.totalorder %s264_s23, %s264_s23 }
   0x7   :  { %p271_p3 = por %p270_p2, %p269_p1 }
   0x9   :  { %p272_p4 = pnand %p271_p3, %p265_p0 }
   0xb   :  { %275 = shalt.err (!%p272_p4)
}
   0xc   :  { %s323_s24 = smov 64   ;;  %s324_s25 = smov 4  }
   0xd   :  { %32 = dma.hbm_to_vmem [thread:$0]  %s400_s3, 256, %s27_s22, [#allocation3], %s323_s24, %s323_s24, %s324_s25  }
   0xe   :  { %316 = dma.done.wait [#allocation3], 256  }
   0xf   :  { %317 = vsyncadd [#allocation3], 4294967040  ;;  %v325_v0 = vmov 0.0   ;;  %vm326_vm0 = vmmov 0   ;;  %v252_v1 = vld [vmem:[%s398_s1 + $0x8] sm:$0xff]   ;;  %v254_v3 = vld [vmem:[%s398_s1] sm:$0xff]  }
  0x10   :  { %227 = vmatprep.subr.bf16.mxu0 %v325_v0  ;;  %235 = vmatprep.subr.bf16.mxu1 %v325_v0  ;;  %v253_v2 = vld [vmem:[#allocation2 + $0x8] sm:$0xff]   ;;  %v255_v4 = vld [vmem:[#allocation2] sm:$0xff]   ;;  %vm65_vm1 = vcmask 261120   ;;  %vm110_vm2 = vcmask 130048   ;;  %vm177_vm3 = vcmask 392192   ;;  %s328_s15 = smov [#allocation6]  }
  0x11   :  { %231 = vmatprep.mubr.msk.bf16.mxu0 %vm326_vm0, %v325_v0  ;;  %239 = vmatprep.mubr.msk.bf16.mxu1 %vm326_vm0, %v325_v0  ;;  %v39_v5 = vld [vmem:[%s397_s0] sm:$0xff]  ;;  %v40_v6 = vld [vmem:[%s397_s0 + $0x8] sm:$0xff]  ;;  %s327_s0 = smov [#allocation5]   ;;  %s197_s16 = sshll.u32 %s328_s15, 4  ;;  %s198_s16 = int_to_ptr.vmem [resolvable:$true] %s197_s16 }
  0x12   :  { %228 = vmatpush3.bf16.msra.mxu0 %v252_v1  ;;  %236 = vmatpush3.bf16.msra.mxu1 %v253_v2  ;;  %v41_v7 = vpack.c.bf16 %v40_v6, %v39_v5  ;;  %v213_v8 = vld [vmem:[%s399_s2] ss:$0 sm:$0xff]  ;;  %s185_s14 = sshll.u32 %s327_s0, 4  ;;  %s186_s14 = int_to_ptr.vmem [resolvable:$true] %s185_s14 }
  0x13   :  { %229 = vmatprep.subr.bf16.mxu0 %v325_v0  ;;  %237 = vmatprep.subr.bf16.mxu1 %v325_v0  ;;  %v217_v9 = vld [vmem:[%s401_s4] ss:$0 sm:$0xff]  ;;  %s276_s2 = scalar_lea.vmem %s186_s14, 256  ;;  %p281_p6 = scmp.lt.s32.totalorder %s186_s14, %s186_s14 }
  0x14   :  { %p277_p5 = scmp.ne.s32.totalorder %s186_s14, %s276_s2  ;;  %p282_p7 = scmp.lt.s32.totalorder %s276_s2, %s276_s2 }
  0x16   :  { %230 = vmatpush3.bf16.msra.mxu0 %v254_v3  ;;  %238 = vmatpush3.bf16.msra.mxu1 %v255_v4  ;;  %p283_p8 = por %p282_p7, %p281_p6 }
  0x18   :  { %p284_p9 = pnand %p283_p8, %p277_p5 }
  0x19   :  { %232 = vmatmul.mubr.msk.bf16.vlgmr.msra.gmra.mxu0 %vm65_vm1, %v41_v7  ;;  %240 = vmatmul.mubr.msk.bf16.vlgmr.msra.gmra.mxu1 %vm65_vm1, %v41_v7 }
  0xd9   :  { %v103_v10 = vpop.f32.mrf.mxu0  ;;  %v170_v12 = vpop.f32.mrf.mxu1 }
  0xda   :  { %v104_v11 = vadd.f32 %v213_v8, %v103_v10  ;;  %v171_v13 = vadd.f32 %v217_v9, %v170_v12 }
  0xdb   :  { %v233_v14 = vpop.f32.mrf.mxu0  ;;  %v241_v15 = vpop.f32.mrf.mxu1 }
  0xdc   :  { %111 = vst.msk [vmem:[#allocation5] sm:$0xff] %vm110_vm2, %v104_v11 }
  0xdd   :  { %178 = vst.msk [vmem:[#allocation6] sm:$0xff] %vm177_vm3, %v171_v13  ;;  %v106_v16 = vpop.f32.mrf.mxu0  ;;  %v173_v18 = vpop.f32.mrf.mxu1 }
  0xde   :  { %v107_v17 = vadd.f32 %v213_v8, %v106_v16  ;;  %v174_v19 = vadd.f32 %v217_v9, %v173_v18 }
  0xdf   :  { %v234_v20 = vpop.f32.mrf.mxu0  ;;  %v242_v21 = vpop.f32.mrf.mxu1 }
  0xe0   :  { %112 = vst.msk [vmem:[#allocation5 + $0x8] sm:$0xff] %vm110_vm2, %v107_v17 }
  0xe1   :  { %179 = vst.msk [vmem:[#allocation6 + $0x8] sm:$0xff] %vm177_vm3, %v174_v19 }
  0xe2   :  { %287 = shalt.err (!%p284_p9)
}
  0xe3   :  { %s329_s4 = smov 128   ;;  %s330_s17 = smov 8  }
  0xe4   :  { %191 = dma.vmem_to_hbm [thread:$0]  %s186_s14, 256, %s402_s5, [#allocation4], %s329_s4, %s329_s4, %s330_s17  }
  0xe5   :  { %s296_s20 = scalar_lea.vmem %s198_s16, 256  ;;  %p301_p11 = scmp.lt.s32.totalorder %s198_s16, %s198_s16 }
  0xe6   :  { %p297_p10 = scmp.ne.s32.totalorder %s198_s16, %s296_s20  ;;  %p302_p12 = scmp.lt.s32.totalorder %s296_s20, %s296_s20 }
  0xe8   :  { %p303_p13 = por %p302_p12, %p301_p11 }
  0xea   :  { %p304_p0 = pnand %p303_p13, %p297_p10 }
  0xec   :  { %307 = shalt.err (!%p304_p0)
}
  0xed   :  { %203 = dma.vmem_to_hbm [thread:$0]  %s198_s16, 256, %s403_s6, [#allocation7], %s329_s4, %s329_s4, %s330_s17  }
  0xee   :  { %318 = dma.done.wait [#allocation4], 256  }
  0xef   :  { %319 = vsyncadd [#allocation4], 4294967040 }
  0xf0   :  { %320 = dma.done.wait [#allocation7], 256  }
  0xf1   :  { %321 = vsyncadd [#allocation7], 4294967040 }
  0xf2   :  { %210 = vsyncpa [#allocation3], 1 }
  0xf3   :  { %211 = vsyncpa [#allocation4], 1 }
  0xf4   :  { %212 = vsyncpa [#allocation7], 1 }

</bundles_post_ra>
